<compile_context>
chip_gen: v7x
topology: tpu7x:2x2x1
jax: 0.10.0
libtpu: 0.0.40
codegen_flags: <defaults>
</compile_context>

<pallas_src>
import functools

import jax
import jax.numpy as jnp
from jax import lax
from jax.experimental import pallas as pl
from jax.experimental.pallas import tpu as pltpu


# Lane-dense padded sizes for the matmul outputs (multiples of 128).
COUT_PAD = 128      # encoder channels: nc = 32 -> 128 (row NC holds the folded FC bias)
NCLS_PAD = 128      # packed head width: 6 + 4 + 4 = 14 -> 128 (lane-dense output)
OUT_SUBLANES = 8    # sublane-full output tile

_TM_TARGET = 2048     # spatial rows per grid step (HBM-bound: big tiles, few steps)
_CHUNK_TARGET = 128   # rows per in-kernel matmul chunk ((128,128) f32 = 16 vregs)


# ------------------------------------------------------------------
# Fused Pallas kernel: conv(im2col matmul) + ReLU + avg-pool + 3 FC heads
# ------------------------------------------------------------------
def _fused_enc_heads_kernel(p_ref, wconv_ref, wfc_ref, o_ref, acc_ref, *,
                            inv_hw, bias_row, chunk, n_chunks, unroll):
    m = pl.program_id(1)

    @pl.when(m == 0)
    def _init():
        acc_ref[...] = jnp.zeros_like(acc_ref)

    # Encoder conv tile as an im2col matmul (bf16 operands, f32 MXU accumulation),
    # ReLU, with the adaptive average pool folded into a running per-channel sum.
    # Chunked over `chunk`-row sub-tiles so the (chunk, COUT_PAD) f32 intermediate
    # never spills the vreg file even when TM is large.
    w_conv = wconv_ref[...]                                   # (K, COUT_PAD) bf16

    def chunk_body(c, acc):
        start = pl.multiple_of(c * chunk, chunk)
        rows = p_ref[0, pl.ds(start, chunk), :]               # (chunk, K) bf16
        conv = jnp.maximum(
            jnp.dot(rows, w_conv, preferred_element_type=jnp.float32), 0.0)
        return acc + jnp.sum(conv, axis=0, keepdims=True)     # (1, COUT_PAD) f32

    acc_ref[...] += lax.fori_loop(
        0, n_chunks, chunk_body, jnp.zeros((1, COUT_PAD), jnp.float32),
        unroll=unroll)

    @pl.when(m == pl.num_programs(1) - 1)
    def _finalize():
        pooled = acc_ref[...] * inv_hw        # AdaptiveAvgPool2d((1,1)); already >= 0
        # Head ReLU and Dropout(p=0.15) are identities here (pooled >= 0, eval mode).
        # FC bias is folded into wfc row `bias_row` via an indicator feature column.
        # Invariant: pooled[:, NC:] is exactly zero because w_conv's padded columns
        # are exactly zero — keep that if the weight packing ever changes.
        ones_col = (jax.lax.broadcasted_iota(jnp.int32, pooled.shape, 1) == bias_row)
        feat = (pooled + ones_col.astype(jnp.float32)).astype(jnp.bfloat16)
        logits = jnp.dot(feat, wfc_ref[...],
                         preferred_element_type=jnp.float32)   # (1, NCLS_PAD) f32
        o_ref[0] = jnp.broadcast_to(logits, o_ref.shape[1:])   # sublane-full store


# ------------------------------------------------------------------
# Wrapper glue (im2col / weight packing / tile choice / pallas_call plumbing)
# ------------------------------------------------------------------
def _im2col_rows(x):
    """x: (B, Cin, H, W) -> channels-last 3x3 patch rows (B, H*W, Cin*9), bf16.

    K is NOT lane-padded in HBM (full-extent last dim is a legal BlockSpec);
    the cast to bf16 happens before the tap stack so every intermediate is half-size.
    """
    B, C, H, W = x.shape
    xcl = jnp.transpose(x, (0, 2, 3, 1)).astype(jnp.bfloat16)   # (B, H, W, C)
    xp = jnp.pad(xcl, ((0, 0), (1, 1), (1, 1), (0, 0)))         # pad=1 (SAME)
    taps = [xp[:, dh:dh + H, dw:dw + W, :] for dh in range(3) for dw in range(3)]
    p = jnp.stack(taps, axis=-1)                                # (B, H, W, C, 9)
    return p.reshape(B, H * W, C * 9)                           # (cin, kh, kw) order


def _choose_spatial_tile(hw, tm_target=_TM_TARGET):
    """Pick (tm, hw_total): row-tile size (mult of 8) and padded total row count."""
    hw8 = -(-hw // 8) * 8
    if hw8 <= tm_target:
        return hw8, hw8                        # single spatial tile
    best = 8
    for d in range(tm_target - tm_target % 8, 7, -8):
        if hw8 % d == 0:
            best = d
            break
    if best >= 256:
        return best, hw8
    # No decent divisor: pad rows up to a multiple of the target tile instead.
    return tm_target, -(-hw8 // tm_target) * tm_target


def _chunk_rows(tm, target=_CHUNK_TARGET):
    """Largest multiple-of-8 divisor of tm that is <= target (in-kernel sub-tile)."""
    if tm <= target:
        return tm
    for c in range(target, 7, -8):
        if tm % c == 0:
            return c
    return tm


def _vmem_limit_bytes():
    """Gate the scoped-VMEM limit per generation (v7x only has 64 MiB physical)."""
    try:
        cap = pltpu.get_tpu_info().vmem_capacity_bytes
        return int(min(cap // 2, 64 * 1024 * 1024))
    except Exception:  # pragma: no cover - interpret mode / older jax
        return 32 * 1024 * 1024


def classification_multihead_model(x, params):
    """Forward: enc(x) -> (head_isup(x), head_gleason_major(x), head_gleason_minor(x))."""
    B, Cin, H, W = x.shape
    HW = H * W
    K = Cin * 9
    NC = params["enc_conv_w"].shape[0]
    n_isup = params["fc_isup_w"].shape[0]
    n_gmaj = params["fc_gmaj_w"].shape[0]
    n_gmin = params["fc_gmin_w"].shape[0]
    n_total = n_isup + n_gmaj + n_gmin
    assert NC + 1 <= COUT_PAD and n_total <= NCLS_PAD

    TM, HW_total = _choose_spatial_tile(HW)
    chunk = _chunk_rows(TM)
    n_chunks = TM // chunk
    unroll = n_chunks <= 16

    # im2col patch rows, bf16, channels-last, K unpadded (lane dim = Cin*9).
    patches = _im2col_rows(x)                                   # (B, HW, K)
    if HW_total != HW:
        # Zero patch rows contribute 0 after conv+ReLU; pool divides by true HW.
        patches = jnp.pad(patches, ((0, 0), (0, HW_total - HW), (0, 0)))

    # Conv weight (NC, Cin, 3, 3) -> (K, COUT_PAD) bf16; padded COLUMNS stay exact 0
    # (required by the bias-fold trick below).
    w2 = params["enc_conv_w"].reshape(NC, K).T                  # (K, NC)
    w_conv = (jnp.zeros((K, COUT_PAD), jnp.float32)
              .at[:, :NC].set(w2)
              .astype(jnp.bfloat16))

    # All three heads packed into one bf16 FC weight; biases folded into row NC.
    w_fc_all = jnp.concatenate(
        [params["fc_isup_w"].T, params["fc_gmaj_w"].T, params["fc_gmin_w"].T], axis=1)
    b_all = jnp.concatenate(
        [params["fc_isup_b"], params["fc_gmaj_b"], params["fc_gmin_b"]])
    w_fc = (jnp.zeros((COUT_PAD, NCLS_PAD), jnp.float32)
            .at[:NC, :n_total].set(w_fc_all)
            .at[NC, :n_total].set(b_all)
            .astype(jnp.bfloat16))

    out_pad = pl.pallas_call(
        functools.partial(_fused_enc_heads_kernel, inv_hw=1.0 / HW, bias_row=NC,
                          chunk=chunk, n_chunks=n_chunks, unroll=unroll),
        out_shape=jax.ShapeDtypeStruct((B, OUT_SUBLANES, NCLS_PAD), jnp.float32),
        grid_spec=pltpu.PrefetchScalarGridSpec(
            num_scalar_prefetch=0,
            grid=(B, HW_total // TM),
            in_specs=[
                pl.BlockSpec((1, TM, K), lambda b, m: (b, m, 0)),
                pl.BlockSpec((K, COUT_PAD), lambda b, m: (0, 0)),
                pl.BlockSpec((COUT_PAD, NCLS_PAD), lambda b, m: (0, 0)),
            ],
            out_specs=pl.BlockSpec((1, OUT_SUBLANES, NCLS_PAD), lambda b, m: (b, 0, 0)),
            scratch_shapes=[pltpu.VMEM((1, COUT_PAD), jnp.float32)],
        ),
        compiler_params=pltpu.CompilerParams(
            dimension_semantics=("parallel", "arbitrary"),
            vmem_limit_bytes=_vmem_limit_bytes(),
        ),
    )(patches, w_conv, w_fc)

    logits = out_pad[:, 0, :n_total]                            # (B, 14)
    return (logits[:, :n_isup],
            logits[:, n_isup:n_isup + n_gmaj],
            logits[:, n_isup + n_gmaj:n_total])


# ------------------------------------------------------------------
# Pure-JAX reference (same stand-in encoder) for a correctness check
# ------------------------------------------------------------------
def _reference(x, params):
    out = jax.lax.conv_general_dilated(
        x, params["enc_conv_w"], window_strides=(1, 1), padding="SAME",
        dimension_numbers=("NCHW", "OIHW", "NCHW"))
    feat = jnp.maximum(out, 0.0)
    pooled = jnp.maximum(jnp.mean(feat, axis=(2, 3)), 0.0)

    def head(w, b):
        return pooled @ w.T + b

    return (head(params["fc_isup_w"], params["fc_isup_b"]),
            head(params["fc_gmaj_w"], params["fc_gmaj_b"]),
            head(params["fc_gmin_w"], params["fc_gmin_b"]))


# ------------------------------------------------------------------
# Main
# ------------------------------------------------------------------
if __name__ == "__main__":
    B, Cin, H, W = 2, 4, 16, 16       # small NCHW input
    NC = 32                           # encoder output channels (self.nc)
    N_ISUP, N_GMAJ, N_GMIN = 6, 4, 4

    key = jax.random.PRNGKey(0)
    kx, kc, k1, k2, k3, kb1, kb2, kb3 = jax.random.split(key, 8)

    x = jax.random.normal(kx, (B, Cin, H, W), dtype=jnp.float32)
    params = {
        "enc_conv_w": 0.1 * jax.random.normal(kc, (NC, Cin, 3, 3), dtype=jnp.float32),
        "fc_isup_w": 0.05 * jax.random.normal(k1, (N_ISUP, NC), dtype=jnp.float32),
        "fc_isup_b": 0.01 * jax.random.normal(kb1, (N_ISUP,), dtype=jnp.float32),
        "fc_gmaj_w": 0.05 * jax.random.normal(k2, (N_GMAJ, NC), dtype=jnp.float32),
        "fc_gmaj_b": 0.01 * jax.random.normal(kb2, (N_GMAJ,), dtype=jnp.float32),
        "fc_gmin_w": 0.05 * jax.random.normal(k3, (N_GMIN, NC), dtype=jnp.float32),
        "fc_gmin_b": 0.01 * jax.random.normal(kb3, (N_GMIN,), dtype=jnp.float32),
    }

    outs = jax.block_until_ready(classification_multihead_model(x, params))
    assert outs[0].shape == (B, N_ISUP)
    assert outs[1].shape == (B, N_GMAJ)
    assert outs[2].shape == (B, N_GMIN)

    refs = _reference(x, params)
    for got, ref in zip(outs, refs):
        assert jnp.allclose(got, ref, atol=2e-2, rtol=2e-2), (got, ref)

    print("KERNEL_OK")
</pallas_src>

<mosaic_0001>
module attributes {stable_mosaic.version = 11 : i64} {
  func.func @_fused_enc_heads_kernel(%arg0: i32, %arg1: i32, %arg2: memref<1x256x36xbf16, #tpu.memory_space<vmem>>, %arg3: memref<36x128xbf16, #tpu.memory_space<vmem>>, %arg4: memref<128x128xbf16, #tpu.memory_space<vmem>>, %arg5: memref<1x8x128xf32, #tpu.memory_space<vmem>>, %arg6: memref<1x128xf32, #tpu.memory_space<vmem>>) attributes {dimension_semantics = [#tpu.dimension_semantics<parallel>, #tpu.dimension_semantics<arbitrary>], iteration_bounds = array<i64: 2, 1>, scalar_prefetch = 0 : i64, scratch_operands = 1 : i64, tpu.core_type = #tpu.core_type<tc>, window_params = [{transform_indices = @transform_0, window_bounds = array<i64: 1, 256, 36>}, {pipeline_mode = #tpu.pipeline_mode<synchronous>, transform_indices = @transform_1, window_bounds = array<i64: 36, 128>}, {pipeline_mode = #tpu.pipeline_mode<synchronous>, transform_indices = @transform_2, window_bounds = array<i64: 128, 128>}, {transform_indices = @transform_3, window_bounds = array<i64: 1, 8, 128>}]} {
    %c0_i32 = arith.constant 0 : i32
    %0 = arith.cmpi eq, %arg1, %c0_i32 : i32
    %1 = arith.extui %0 : i1 to i32
    %c0_i32_0 = arith.constant 0 : i32
    %2 = arith.cmpi ne, %1, %c0_i32_0 : i32
    scf.if %2 {
      %cst_20 = arith.constant 0.000000e+00 : f32
      %33 = vector.broadcast %cst_20 : f32 to vector<1x128xf32>
      %c0_21 = arith.constant 0 : index
      %c0_22 = arith.constant 0 : index
      %34 = vector.load %arg6[%c0_21, %c0_22] : memref<1x128xf32, #tpu.memory_space<vmem>>, vector<1x128xf32>
      tpu.vector_store %arg6[%c0_21, %c0_22], %33 {strides = array<i32>} : memref<1x128xf32, #tpu.memory_space<vmem>>, vector<1x128xf32>,
    } else {
    }
    %c0 = arith.constant 0 : index
    %c0_1 = arith.constant 0 : index
    %3 = vector.load %arg3[%c0, %c0_1] : memref<36x128xbf16, #tpu.memory_space<vmem>>, vector<36x128xbf16>
    %c0_2 = arith.constant 0 : index
    %c0_3 = arith.constant 0 : index
    %4 = vector.load %arg6[%c0_2, %c0_3] : memref<1x128xf32, #tpu.memory_space<vmem>>, vector<1x128xf32>
    %cst = arith.constant 0.000000e+00 : f32
    %5 = vector.broadcast %cst : f32 to vector<1x128xf32>
    %c0_i32_4 = arith.constant 0 : i32
    %c128_i32 = arith.constant 128 : i32
    %6 = arith.muli %c0_i32_4, %c128_i32 : i32
    %7 = tpu.assume_multiple %6, 128 : i32
    %c0_5 = arith.constant 0 : index
    %8 = arith.index_cast %7 : i32 to index
    %c0_6 = arith.constant 0 : index
    %9 = vector.load %arg2[%c0_5, %8, %c0_6] : memref<1x256x36xbf16, #tpu.memory_space<vmem>>, vector<1x128x36xbf16>
    %10 = vector.shape_cast %9 : vector<1x128x36xbf16> to vector<128x36xbf16>
    %cst_7 = arith.constant dense<0.000000e+00> : vector<128x128xf32>
    %11 = tpu.matmul %10, %3, %cst_7 {dimension_numbers = #tpu.dot_dimension_numbers<[1], [0], [0], [1], [0, 0, 1, 1], [], []>} : vector<128x36xbf16>, vector<36x128xbf16>, vector<128x128xf32> -> vector<128x128xf32>
    %cst_8 = arith.constant 0.000000e+00 : f32
    %12 = vector.broadcast %cst_8 : f32 to vector<128x128xf32>
    %13 = arith.maximumf %11, %12 : vector<128x128xf32>
    %cst_9 = arith.constant dense<0.000000e+00> : vector<128xf32>
    %14 = vector.multi_reduction <add>, %13, %cst_9 [0] : vector<128x128xf32> to vector<128xf32>
    %15 = vector.shape_cast %14 : vector<128xf32> to vector<1x128xf32>
    %16 = arith.addf %5, %15 : vector<1x128xf32>
    %c1_i32 = arith.constant 1 : i32
    %c128_i32_10 = arith.constant 128 : i32
    %17 = arith.muli %c1_i32, %c128_i32_10 : i32
    %18 = tpu.assume_multiple %17, 128 : i32
    %c0_11 = arith.constant 0 : index
    %19 = arith.index_cast %18 : i32 to index
    %c0_12 = arith.constant 0 : index
    %20 = vector.load %arg2[%c0_11, %19, %c0_12] : memref<1x256x36xbf16, #tpu.memory_space<vmem>>, vector<1x128x36xbf16>
    %21 = vector.shape_cast %20 : vector<1x128x36xbf16> to vector<128x36xbf16>
    %cst_13 = arith.constant dense<0.000000e+00> : vector<128x128xf32>
    %22 = tpu.matmul %21, %3, %cst_13 {dimension_numbers = #tpu.dot_dimension_numbers<[1], [0], [0], [1], [0, 0, 1, 1], [], []>} : vector<128x36xbf16>, vector<36x128xbf16>, vector<128x128xf32> -> vector<128x128xf32>
    %cst_14 = arith.constant 0.000000e+00 : f32
    %23 = vector.broadcast %cst_14 : f32 to vector<128x128xf32>
    %24 = arith.maximumf %22, %23 : vector<128x128xf32>
    %cst_15 = arith.constant dense<0.000000e+00> : vector<128xf32>
    %25 = vector.multi_reduction <add>, %24, %cst_15 [0] : vector<128x128xf32> to vector<128xf32>
    %26 = vector.shape_cast %25 : vector<128xf32> to vector<1x128xf32>
    %27 = arith.addf %16, %26 : vector<1x128xf32>
    %c2_i32 = arith.constant 2 : i32
    %28 = arith.addf %4, %27 : vector<1x128xf32>
    %c0_16 = arith.constant 0 : index
    %c0_17 = arith.constant 0 : index
    %29 = vector.load %arg6[%c0_16, %c0_17] : memref<1x128xf32, #tpu.memory_space<vmem>>, vector<1x128xf32>
    tpu.vector_store %arg6[%c0_16, %c0_17], %28 {strides = array<i32>} : memref<1x128xf32, #tpu.memory_space<vmem>>, vector<1x128xf32>,
    %c0_i32_18 = arith.constant 0 : i32
    %30 = arith.cmpi eq, %arg1, %c0_i32_18 : i32
    %31 = arith.extui %30 : i1 to i32
    %c0_i32_19 = arith.constant 0 : i32
    %32 = arith.cmpi ne, %31, %c0_i32_19 : i32
    scf.if %32 {
      %c0_20 = arith.constant 0 : index
      %c0_21 = arith.constant 0 : index
      %33 = vector.load %arg6[%c0_20, %c0_21] : memref<1x128xf32, #tpu.memory_space<vmem>>, vector<1x128xf32>
      %cst_22 = arith.constant 3.906250e-03 : f32
      %34 = vector.broadcast %cst_22 : f32 to vector<1x128xf32>
      %35 = arith.mulf %33, %34 : vector<1x128xf32>
      %36 = tpu.iota {dimensions = array<i32: 1>} : vector<1x128xi32>
      %c32_i32 = arith.constant 32 : i32
      %37 = vector.broadcast %c32_i32 : i32 to vector<1x128xi32>
      %38 = arith.cmpi eq, %36, %37 : vector<1x128xi32>
      %39 = arith.extui %38 : vector<1x128xi1> to vector<1x128xi32>
      %40 = arith.sitofp %39 : vector<1x128xi32> to vector<1x128xf32>
      %41 = arith.addf %35, %40 : vector<1x128xf32>
      %42 = arith.truncf %41 : vector<1x128xf32> to vector<1x128xbf16>
      %c0_23 = arith.constant 0 : index
      %c0_24 = arith.constant 0 : index
      %43 = vector.load %arg4[%c0_23, %c0_24] : memref<128x128xbf16, #tpu.memory_space<vmem>>, vector<128x128xbf16>
      %cst_25 = arith.constant dense<0.000000e+00> : vector<1x128xf32>
      %44 = tpu.matmul %42, %43, %cst_25 {dimension_numbers = #tpu.dot_dimension_numbers<[1], [0], [0], [1], [0, 0, 1, 1], [], []>} : vector<1x128xbf16>, vector<128x128xbf16>, vector<1x128xf32> -> vector<1x128xf32>
      %45 = vector.shape_cast %44 : vector<1x128xf32> to vector<1x128xf32>
      %46 = vector.broadcast %45 : vector<1x128xf32> to vector<8x128xf32>
      %c0_26 = arith.constant 0 : index
      %c0_27 = arith.constant 0 : index
      %c0_28 = arith.constant 0 : index
      %47 = vector.load %arg5[%c0_26, %c0_27, %c0_28] : memref<1x8x128xf32, #tpu.memory_space<vmem>>, vector<1x8x128xf32>
      %48 = vector.shape_cast %47 : vector<1x8x128xf32> to vector<8x128xf32>
      %49 = vector.shape_cast %46 : vector<8x128xf32> to vector<1x8x128xf32>
      tpu.vector_store %arg5[%c0_26, %c0_27, %c0_28], %49 {strides = array<i32>} : memref<1x8x128xf32, #tpu.memory_space<vmem>>, vector<1x8x128xf32>,
    } else {
    }
    return
  }
  func.func @transform_0(%arg0: i32, %arg1: i32) -> (i32, i32, i32) {
    %c0_i32 = arith.constant 0 : i32
    %c0_i32_0 = arith.constant 0 : i32
    return %arg0, %arg1, %c0_i32 : i32, i32, i32
  }
  func.func @transform_1(%arg0: i32, %arg1: i32) -> (i32, i32) {
    %c0_i32 = arith.constant 0 : i32
    %c0_i32_0 = arith.constant 0 : i32
    %c0_i32_1 = arith.constant 0 : i32
    return %c0_i32, %c0_i32_0 : i32, i32
  }
  func.func @transform_2(%arg0: i32, %arg1: i32) -> (i32, i32) {
    %c0_i32 = arith.constant 0 : i32
    %c0_i32_0 = arith.constant 0 : i32
    %c0_i32_1 = arith.constant 0 : i32
    return %c0_i32, %c0_i32_0 : i32, i32
  }
  func.func @transform_3(%arg0: i32, %arg1: i32) -> (i32, i32, i32) {
    %c0_i32 = arith.constant 0 : i32
    %c0_i32_0 = arith.constant 0 : i32
    %c0_i32_1 = arith.constant 0 : i32
    return %arg0, %c0_i32, %c0_i32_0 : i32, i32, i32
  }
}

</mosaic_0001>

<bundles_post_ra>
// kernel: tpu_custom_call.1
= control target key start
LH: loop header
LB: loop body
LE: loop exit
PB: predicated region body
PF: predicated region fallthrough
CT: control target
= control target key end

     0   :  { %8 = vsyncpa [#allocation4], 0  ;;  %s1417_s0 = inlined_call_operand.vmem [shape: bf16[2,256,36], index: 0, kind: input, shape index: {}]   ;;  %s1418_s1 = inlined_call_operand.vmem [shape: bf16[36,128], index: 1, kind: input, shape index: {}]   ;;  %s1419_s2 = inlined_call_operand.vmem [shape: bf16[128,128], index: 2, kind: input, shape index: {}]   ;;  %s1420_s3 = inlined_call_operand.hbm [shape: f32[2,8,128], index: 3, kind: output, shape index: {}]  }
   0x1   :  { %10 = vsyncpa [#allocation4 + $0x1], 0  ;;  %s1227_s12 = smov 0   ;;  %s1229_s13 = smov 0  }
   0x2   :  { %s1231_s14 = smov 0   ;;  %s1233_s15 = smov 0  }
   0x3   :  { %s1235_s16 = smov 0   ;;  %s1237_s17 = smov 0  }
   0x4 LB: > { %s870_s18 = sadd.s32 4294967295, %s1202_s17   ;;  %s871_s19 = sadd.s32 4294967294, %s1202_s17   ;;  %s1202_s17 = sphi %s1237_s17, %s16_s17   ;;  %s1198_s16 = sphi %s1235_s16, %s1427_s16   ;;  %s1194_s15 = sphi %s1233_s15, %s1426_s15   ;;  %s1190_s14 = sphi %s1231_s14, %s1425_s14   ;;  %s1186_s13 = sphi %s1229_s13, %s1424_s13   ;;  %s1182_s12 = sphi %s1227_s12, %s1423_s12  }
   0x5   : > { %s28_s20 = sadd.s32 1, %s1198_s16  ;;  %s105_s21 = sadd.s32 1, %s1190_s14 }
   0x6   : > { %p30_p0 = scmp.ge.s32.totalorder %s28_s20, 2  ;;  %p115_p1 = scmp.ne.s32.totalorder %s1190_s14, %s1186_s13 }
   0x7   : > { %p116_p2 = scmp.eq.s32.totalorder %s870_s18, 1  ;;  %p121_p3 = scmp.ne.s32.totalorder %s1186_s13, %s1182_s12 }
   0x8   : > { %s1429_s20 = smov (%p30_p0, %s28_s20), 0  ;;  %p122_p5 = scmp.eq.s32.totalorder %s871_s19, 1 }
   0x9   : > { %p1267_p4 = por %p116_p2, %p115_p1  ;;  %s102_s23 = ssub.s32 %s1198_s16, %s1429_s20 }
   0xa   : > { %p874_p6 = scmp.ge.s32.totalorder %s1202_s17, 1  ;;  %p103_p7 = scmp.eq.s32.totalorder %s102_s23, 0 }
   0xb   : > { %p1274_p8 = por %p122_p5, %p121_p3  ;;  %p159_p9 = scmp.lt.s32.totalorder %s1202_s17, 3 }
   0xc   : > { %s1280_s25 = scalar_select %p103_p7, %s1190_s14, %s105_s21  }
   0xd   : > { %p160_p10 = pnand %p874_p6, %p159_p9 }
   0xe   : > { %v1097_v0 = vld [vmem:[%s1418_s1] sm:$0xff] (!%p160_p10)   ;;  %v1098_v1 = vld [vmem:[%s1418_s1 + $0x8] sm:$0xff] (!%p160_p10)   ;;  %p188_p11 = scmp.lt.s32.totalorder (!%p160_p10), %s1194_s15, 1  ;;  %v1099_v2 = vld [vmem:[%s1418_s1 + $0x10] ss:$0 sps:$4 sm:$0x33] (!%p160_p10)  }
   0xf   : > { %163 = sbr.rel (%p160_p10) target bundleno = 534 (0x216), region = 32  ;;  %974 = vmatprep.subr.bf16.mxu0 (!%p160_p10), %v1097_v0  ;;  %996 = vmatprep.subr.bf16.mxu1 (!%p160_p10), %v1097_v0  ;;  %vm305_vm0 = vcmask (!%p160_p10), 1041408   ;;  %vm280_vm1 = vcmask (!%p160_p10), 293888   ;;  %v1116_v20 = vld [vmem:[%s1419_s2] sm:$0xff] (!%p160_p10)   ;;  %v1204_v21 = vmov (!%p160_p10), 0.0   ;;  %v1117_v22 = vld [vmem:[%s1419_s2 + $0x8] sm:$0xff] (!%p160_p10)  }
  0x10   : > { %975 = vmatpush3.bf16.msra.mxu0 (!%p160_p10), %v1097_v0  ;;  %997 = vmatpush3.bf16.msra.mxu1 (!%p160_p10), %v1097_v0  ;;  %v307_v4 = vsel (!%p160_p10), %vm305_vm0, %v1099_v2, 0  ;;  %202 = vst [vmem:[#allocation2] sm:$0x1] (!%p160_p10), %v1204_v21  ;;  %v1118_v23 = vld [vmem:[%s1419_s2 + $0x10] sm:$0xff] (!%p160_p10)   ;;  %v1119_v24 = vld [vmem:[%s1419_s2 + $0x18] sm:$0xff] (!%p160_p10)   ;;  %v1120_v25 = vld [vmem:[%s1419_s2 + $0x20] sm:$0xff] (!%p160_p10)  }
  0x11   : > { %976 = vmatprep.subr.bf16.mxu0 (!%p160_p10), %v1098_v1  ;;  %998 = vmatprep.subr.bf16.mxu1 (!%p160_p10), %v1098_v1  ;;  %v1121_v26 = vld [vmem:[%s1419_s2 + $0x28] sm:$0xff] (!%p160_p10)   ;;  %vm1205_vm2 = vmmov (!%p160_p10), 0   ;;  %v1122_v27 = vld [vmem:[%s1419_s2 + $0x30] sm:$0xff] (!%p160_p10)   ;;  %v1123_v28 = vld [vmem:[%s1419_s2 + $0x38] sm:$0xff] (!%p160_p10)   ;;  %s939_s11 = sshll.u32 (!%p160_p10), %s1194_s15, 7  ;;  %s1206_s28 = smov (!%p160_p10), [#allocation3]  }
  0x12   : > { %s1370_s26 = scalar_lea.hbm (!%p160_p10), %s1420_s3, %s939_s11  ;;  %s1128_s29 = sshll.u32 (!%p160_p10), %s1206_s28, 4  ;;  %s1129_s29 = int_to_ptr.vmem [resolvable:$false] %s1128_s29 }
  0x13   : > { %s1130_s30 = scalar_lea.vmem (!%p160_p10), %s1129_s29, 256 }
  0x14   : > { %977 = vmatpush3.bf16.msra.mxu0 (!%p160_p10), %v1098_v1  ;;  %999 = vmatpush3.bf16.msra.mxu1 (!%p160_p10), %v1098_v1 }
  0x15   : > { %1038 = vmatprep.subr.msk.bf16.mxu0 (!%p160_p10), %vm305_vm0, %v1099_v2  ;;  %1039 = vmatprep.subr.msk.bf16.mxu1 (!%p160_p10), %vm305_vm0, %v1099_v2 }
  0x16   : > { %s189_s5 = scalar_select %p188_p11, %s1194_s15, 1 }
  0x18   : > { %s942_s6 = sshll.u32 %s189_s5, 7  ;;  %979 = vmatpush3.bf16.msra.mxu0 %v307_v4  ;;  %1001 = vmatpush3.bf16.msra.mxu1 %v307_v4 }
  0x19   : > { %s1296_s9 = scalar_lea.vmem %s1417_s0, %s942_s6  ;;  %1018 = vmatprep.subr.bf16.mxu0 %v1204_v21 }
  0x1a   : > { %v1100_v3 = vld [vmem:[%s1296_s9] sm:$0xff]   ;;  %v1102_v6 = vld [vmem:[%s1296_s9 + $0x8] sm:$0xff]   ;;  %v1104_v8 = vld [vmem:[%s1296_s9 + $0x10] sm:$0xff]  }
  0x1b   : > { %v1101_v5 = vld [vmem:[%s1296_s9 + $0x40] sm:$0xff]   ;;  %980 = vmatprep.mubr.msk.bf16.mxu0 %vm280_vm1, %v1100_v3  ;;  %v1103_v7 = vld [vmem:[%s1296_s9 + $0x48] sm:$0xff]   ;;  %v1105_v9 = vld [vmem:[%s1296_s9 + $0x50] sm:$0xff]  }
  0x1c   : > { %1002 = vmatprep.mubr.msk.bf16.mxu1 %vm280_vm1, %v1101_v5  ;;  %981 = vmatmul.mubr.msk.bf16.vlgmr.msra.gmra.mrb[0].mxu0 %vm280_vm1, %v1102_v6  ;;  %v1106_v10 = vld [vmem:[%s1296_s9 + $0x18] sm:$0xff]   ;;  %v1108_v12 = vld [vmem:[%s1296_s9 + $0x20] sm:$0xff]   ;;  %v1110_v14 = vld [vmem:[%s1296_s9 + $0x28] sm:$0xff]  }
  0x1d   : > { %1003 = vmatmul.mubr.msk.bf16.vlgmr.msra.gmra.mrb[0].mxu1 %vm280_vm1, %v1103_v7  ;;  %984 = vmatprep.mubr.msk.bf16.mxu0 %vm280_vm1, %v1104_v8  ;;  %v1107_v11 = vld [vmem:[%s1296_s9 + $0x58] sm:$0xff]   ;;  %v1109_v13 = vld [vmem:[%s1296_s9 + $0x60] sm:$0xff]   ;;  %v1111_v15 = vld [vmem:[%s1296_s9 + $0x68] sm:$0xff]  }
  0x1e   : > { %1006 = vmatprep.mubr.msk.bf16.mxu1 %vm280_vm1, %v1105_v9  ;;  %v1112_v16 = vld [vmem:[%s1296_s9 + $0x30] sm:$0xff]   ;;  %v1114_v18 = vld [vmem:[%s1296_s9 + $0x38] sm:$0xff]   ;;  %1019 = vmatpush3.bf16.msra.mxu0 %v1116_v20 }
  0x1f   : > { %v1113_v17 = vld [vmem:[%s1296_s9 + $0x70] sm:$0xff]   ;;  %v1115_v19 = vld [vmem:[%s1296_s9 + $0x78] sm:$0xff]   ;;  %1020 = vmatprep.subr.bf16.mxu0 %v1204_v21  ;;  %s184_s9 = sand.u32 1, %s1186_s13  }
  0x20   : > { %s875_s10 = sshll.u32 %s184_s9, 3  ;;  %s784_s27 = scalar_lea.sflag [#allocation4], %s184_s9 }
  0x21   : > { %s186_s18 = scalar_lea.vmem [#allocation3], %s875_s10 }
  0x22   : > { %1021 = vmatpush3.bf16.msra.mxu0 %v1117_v22  ;;  %s797_s19 = sshll.u32 %s186_s18, 4  ;;  %s1372_s19 = int_to_ptr.vmem [resolvable:$true] %s797_s19 }
  0x23   : > { %1022 = vmatprep.subr.bf16.mxu0 %v1204_v21  ;;  %s1124_s15 = scalar_lea.vmem %s1372_s19, 128  ;;  %p1131_p1 = scmp.lt.s32.totalorder %s1372_s19, %s1129_s29 }
  0x24   : > { %985 = vmatmul.mubr.msk.bf16.gmra.mrb[4].mxu0 %vm280_vm1, %v1106_v10  ;;  %p1125_p12 = scmp.ne.s32.totalorder %s1372_s19, %s1124_s15  ;;  %p1132_p2 = scmp.lt.s32.totalorder %s1130_s30, %s1124_s15 }
  0x25   : > { %1007 = vmatmul.mubr.msk.bf16.gmra.mrb[4].mxu1 %vm280_vm1, %v1107_v11  ;;  %988 = vmatprep.mubr.msk.bf16.mxu0 %vm280_vm1, %v1108_v12 }
  0x26   : > { %1010 = vmatprep.mubr.msk.bf16.mxu1 %vm280_vm1, %v1109_v13  ;;  %1023 = vmatpush3.bf16.msra.mxu0 %v1118_v23  ;;  %p1126_p13 = pnand %p1125_p12, %p1267_p4  ;;  %p1133_p3 = por %p1132_p2, %p1131_p1 }
  0x27   : > { %1024 = vmatprep.subr.bf16.mxu0 %v1204_v21 }
  0x28   : > { %p1127_p0 = pneg %p1126_p13 }
  0x2a   : > { %1025 = vmatpush3.bf16.msra.mxu0 %v1119_v24  ;;  %p1134_p5 = pnand %p1133_p3, %p1127_p0 }
  0x2b   : > { %1026 = vmatprep.subr.bf16.mxu0 %v1204_v21 }
  0x2c   : > { %989 = vmatmul.mubr.msk.bf16.gmra.mrb[8].mxu0 %vm280_vm1, %v1110_v14 }
  0x2d   : > { %1011 = vmatmul.mubr.msk.bf16.gmra.mrb[8].mxu1 %vm280_vm1, %v1111_v15  ;;  %992 = vmatprep.mubr.msk.bf16.mxu0 %vm280_vm1, %v1112_v16 }
  0x2e   : > { %1014 = vmatprep.mubr.msk.bf16.mxu1 %vm280_vm1, %v1113_v17  ;;  %1027 = vmatpush3.bf16.msra.mxu0 %v1120_v25 }
  0x2f   : > { %1028 = vmatprep.subr.bf16.mxu0 %v1204_v21 }
  0x32   : > { %1029 = vmatpush3.bf16.msra.mxu0 %v1121_v26 }
  0x33   : > { %1030 = vmatprep.subr.bf16.mxu0 %v1204_v21 }
  0x34   : > { %993 = vmatmul.mubr.msk.bf16.gmra.mrb[12].mxu0 %vm280_vm1, %v1114_v18 }
  0x35   : > { %1015 = vmatmul.mubr.msk.bf16.gmra.mrb[12].mxu1 %vm280_vm1, %v1115_v19  ;;  %1034 = vmatprep.mubr.msk.bf16.mxu0 %vm1205_vm2, %v1204_v21 }
  0x36   : > { %1031 = vmatpush3.bf16.msra.mxu0 %v1122_v27 }
  0x37   : > { %1032 = vmatprep.subr.bf16.mxu0 %v1204_v21 }
  0x3a   : > { %1033 = vmatpush3.bf16.msra.mxu0 %v1123_v28 }
  0xef   : > { %v982_v29 = vpop.f32.mrb[0].mxu0 }
  0xf0   : > { %v1004_v30 = vpop.f32.mrb[0].mxu1  ;;  %v343_v31 = vpop.f32.mrb[1].mxu0  ;;  %v408_v41 = vmax.f32 %v982_v29, 0.0 }
  0xf1   : > { %v559_v32 = vpop.f32.mrb[1].mxu1  ;;  %v983_v33 = vpop.f32.mrb[2].mxu0  ;;  %v406_v37 = vmax.f32 %v343_v31, 0.0  ;;  %v624_v42 = vmax.f32 %v1004_v30, 0.0 }
  0xf2   : > { %v1005_v34 = vpop.f32.mrb[2].mxu1  ;;  %v346_v35 = vpop.f32.mrb[3].mxu0  ;;  %v622_v38 = vmax.f32 %v559_v32, 0.0  ;;  %v409_v45 = vmax.f32 %v983_v33, 0.0 }
  0xf3   : > { %v562_v36 = vpop.f32.mrb[3].mxu1  ;;  %v407_v39 = vmax.f32 %v346_v35, 0.0  ;;  %v625_v46 = vmax.f32 %v1005_v34, 0.0 }
  0xf4   : > { %v623_v40 = vmax.f32 %v562_v36, 0.0 }
  0xf5   : > { %v422_v43 = vadd.f32 %v407_v39, %v406_v37 }
  0xf6   : > { %v638_v44 = vadd.f32 %v623_v40, %v622_v38 }
  0xf7   : > { %v423_v47 = vadd.f32 %v422_v43, %v408_v41  ;;  %v986_v49 = vpop.f32.mrb[4].mxu0 }
  0xf8   : > { %v639_v48 = vadd.f32 %v638_v44, %v624_v42  ;;  %v1008_v50 = vpop.f32.mrb[4].mxu1  ;;  %v359_v51 = vpop.f32.mrb[5].mxu0  ;;  %v412_v1 = vmax.f32 %v986_v49, 0.0 }
  0xf9   : > { %v575_v52 = vpop.f32.mrb[5].mxu1  ;;  %v410_v53 = vmax.f32 %v359_v51, 0.0  ;;  %v424_v54 = vadd.f32 %v423_v47, %v409_v45  ;;  %v987_v57 = vpop.f32.mrb[6].mxu0  ;;  %v628_v2 = vmax.f32 %v1008_v50, 0.0 }
  0xfa   : > { %v626_v55 = vmax.f32 %v575_v52, 0.0  ;;  %v640_v56 = vadd.f32 %v639_v48, %v625_v46  ;;  %v1009_v58 = vpop.f32.mrb[6].mxu1  ;;  %v362_v59 = vpop.f32.mrb[7].mxu0  ;;  %v413_v5 = vmax.f32 %v987_v57, 0.0 }
  0xfb   : > { %v578_v60 = vpop.f32.mrb[7].mxu1  ;;  %v425_v61 = vadd.f32 %v424_v54, %v410_v53  ;;  %v411_v63 = vmax.f32 %v362_v59, 0.0  ;;  %v629_v6 = vmax.f32 %v1009_v58, 0.0 }
  0xfc   : > { %v641_v62 = vadd.f32 %v640_v56, %v626_v55  ;;  %v627_v0 = vmax.f32 %v578_v60, 0.0 }
  0xfd   : > { %v426_v3 = vadd.f32 %v425_v61, %v411_v63 }
  0xfe   : > { %v642_v4 = vadd.f32 %v641_v62, %v627_v0 }
  0xff   : > { %v427_v7 = vadd.f32 %v426_v3, %v412_v1  ;;  %v990_v9 = vpop.f32.mrb[8].mxu0 }
 0x100   : > { %v643_v8 = vadd.f32 %v642_v4, %v628_v2  ;;  %v1012_v10 = vpop.f32.mrb[8].mxu1  ;;  %v375_v11 = vpop.f32.mrb[9].mxu0  ;;  %v416_v26 = vmax.f32 %v990_v9, 0.0 }
 0x101   : > { %v591_v12 = vpop.f32.mrb[9].mxu1  ;;  %v414_v13 = vmax.f32 %v375_v11, 0.0  ;;  %v428_v14 = vadd.f32 %v427_v7, %v413_v5  ;;  %v991_v17 = vpop.f32.mrb[10].mxu0  ;;  %v632_v27 = vmax.f32 %v1012_v10, 0.0  ;;  %v667_v10 = vlaneseq }
 0x102   : > { %v630_v15 = vmax.f32 %v591_v12, 0.0  ;;  %v644_v16 = vadd.f32 %v643_v8, %v629_v6  ;;  %v1013_v18 = vpop.f32.mrb[10].mxu1  ;;  %v378_v19 = vpop.f32.mrb[11].mxu0  ;;  %v417_v30 = vmax.f32 %v991_v17, 0.0  ;;  %v208_v8 = vld [vmem:[#allocation2] sm:$0x1] }
 0x103   : > { %v594_v20 = vpop.f32.mrb[11].mxu1  ;;  %v429_v22 = vadd.f32 %v428_v14, %v414_v13  ;;  %v415_v24 = vmax.f32 %v378_v19, 0.0  ;;  %v633_v31 = vmax.f32 %v1013_v18, 0.0  ;;  %v668_v12 = vand.u32 127, %v667_v10 }
 0x104   : > { %v645_v23 = vadd.f32 %v644_v16, %v630_v15  ;;  %v631_v25 = vmax.f32 %v594_v20, 0.0  ;;  %v779_v18 = vshrl.u32 %v667_v10, 7 }
 0x105   : > { %v430_v28 = vadd.f32 %v429_v22, %v415_v24  ;;  %vm669_vm3 = vcmp.eq.s32.totalorder %v668_v12, 32 }
 0x106   : > { %v646_v29 = vadd.f32 %v645_v23, %v631_v25  ;;  %v929_v14 = vsel %vm669_vm3, 1.0, %v1204_v21  ;;  %v780_v19 = vsub.s32 0, %v779_v18 }
 0x107   : > { %v431_v32 = vadd.f32 %v430_v28, %v416_v26  ;;  %v994_v34 = vpop.f32.mrb[12].mxu0 }
 0x108   : > { %v647_v33 = vadd.f32 %v646_v29, %v632_v27  ;;  %v1016_v35 = vpop.f32.mrb[12].mxu1  ;;  %v391_v36 = vpop.f32.mrb[13].mxu0  ;;  %v420_v50 = vmax.f32 %v994_v34, 0.0 }
 0x109   : > { %v607_v37 = vpop.f32.mrb[13].mxu1  ;;  %v418_v38 = vmax.f32 %v391_v36, 0.0  ;;  %v432_v39 = vadd.f32 %v431_v32, %v417_v30  ;;  %v995_v42 = vpop.f32.mrb[14].mxu0  ;;  %v636_v51 = vmax.f32 %v1016_v35, 0.0 }
 0x10a   : > { %v634_v40 = vmax.f32 %v607_v37, 0.0  ;;  %v648_v41 = vadd.f32 %v647_v33, %v633_v31  ;;  %v1017_v43 = vpop.f32.mrb[14].mxu1  ;;  %v394_v44 = vpop.f32.mrb[15].mxu0  ;;  %v421_v54 = vmax.f32 %v995_v42, 0.0 }
 0x10b   : > { %v610_v45 = vpop.f32.mrb[15].mxu1  ;;  %v433_v46 = vadd.f32 %v432_v39, %v418_v38  ;;  %v419_v48 = vmax.f32 %v394_v44, 0.0  ;;  %v637_v55 = vmax.f32 %v1017_v43, 0.0 }
 0x10c   : > { %v649_v47 = vadd.f32 %v648_v41, %v634_v40  ;;  %v635_v49 = vmax.f32 %v610_v45, 0.0 }
 0x10d   : > { %v434_v52 = vadd.f32 %v433_v46, %v419_v48 }
 0x10e   : > { %v650_v53 = vadd.f32 %v649_v47, %v635_v49 }
 0x10f   : > { %v435_v56 = vadd.f32 %v434_v52, %v420_v50 }
 0x110   : > { %v651_v57 = vadd.f32 %v650_v53, %v636_v51 }
 0x111   : > { %v436_v58 = vadd.f32 %v435_v56, %v421_v54 }
 0x112   : > { %v652_v59 = vadd.f32 %v651_v57, %v637_v55 }
 0x113   : > { %v437_v60 = vrot.slane %v436_v58, 4 }
 0x114   : > { %v653_v61 = vrot.slane %v652_v59, 4 }
 0x115   : > { %v438_v62 = vadd.f32 %v437_v60, %v436_v58 }
 0x116   : > { %v654_v63 = vadd.f32 %v653_v61, %v652_v59 }
 0x117   : > { %v439_v0 = vrot.slane %v438_v62, 2 }
 0x118   : > { %v655_v1 = vrot.slane %v654_v63, 2 }
 0x119   : > { %v440_v2 = vadd.f32 %v439_v0, %v438_v62 }
 0x11a   : > { %v656_v3 = vadd.f32 %v655_v1, %v654_v63 }
 0x11b   : > { %v441_v4 = vrot.slane %v440_v2, 1 }
 0x11c   : > { %v657_v5 = vrot.slane %v656_v3, 1 }
 0x11d   : > { %v442_v6 = vadd.f32 %v441_v4, %v440_v2 }
 0x11e   : > { %v658_v7 = vadd.f32 %v657_v5, %v656_v3 }
 0x120   : > { %v659_v9 = vadd.f32 %v658_v7, %v442_v6 }
 0x122   : > { %v660_v11 = vadd.f32 %v659_v9, %v208_v8 }
 0x124   : > { %661 = vst [vmem:[#allocation2] sm:$0x1] %v660_v11 }
 0x12b   : > { %v665_v13 = vld [vmem:[#allocation2] sm:$0x1] }
 0x12c   : > { %v666_v15 = vmul.f32 0.00390625, %v665_v13 }
 0x12e   : > { %v672_v16 = vadd.f32 %v929_v14, %v666_v15 }
 0x130   : > { %v673_v17 = vpack.c.bf16 %v672_v16, %v672_v16 }
 0x132   : > { %1035 = vmatmul.mubr.bf16.vlgmr.msra.gmra.mrb[16].mxu0 %v673_v17 }
 0x205   : > { %v772_v20 = vpop.f32.mrb[16].mxu0 }
 0x206   : > { %v781_v22 = vrot.slane %v772_v20, %v780_v19  ;;  %v1036_v23 = vpop.f32.mrb[17].mxu0 }
 0x207   : > { %v775_v21 = vpop.f32.mrb[18].mxu0 }
 0x208   : > { %782 = vst [vmem:[%s186_s18] sm:$0xff] %v781_v22  ;;  %v1037_v24 = vpop.f32.mrb[19].mxu0 }
 0x209   : > { %1137 = shalt.err (!%p1134_p5)
}
 0x20a   : > { %s1138_s4 = scalar_lea.hbm %s1370_s26, 128  ;;  %s1142_s7 = scalar_lea.hbm %s1420_s3, 256 }
 0x20b   : > { %p1139_p6 = scmp.ne.s32.totalorder %s1370_s26, %s1138_s4  ;;  %p1143_p10 = scmp.lt.u32.totalorder %s1370_s26, %s1420_s3 }
 0x20c   : > { %p1144_p11 = scmp.lt.u32.totalorder %s1142_s7, %s1138_s4  ;;  %p1146_p13 = scmp.lt.u32.totalorder %s1138_s4, %s1370_s26 }
 0x20d   : > { %p1140_p7 = pnand %p1139_p6, %p1267_p4 }
 0x20e   : > { %p1145_p12 = por %p1144_p11, %p1143_p10 }
 0x20f   : > { %p1141_p9 = pneg %p1140_p7 }
 0x210   : > { %p1147_p0 = por %p1146_p13, %p1145_p12 }
 0x212   : > { %p1148_p1 = pnand %p1147_p0, %p1141_p9 }
 0x214   : > { %1151 = shalt.err (!%p1148_p1)
}
 0x215   : > { %1040 = dma.vmem_to_hbm [thread:$0]  (%p1267_p4), %s1372_s19, 128, %s1370_s26, %s784_s27  }
 0x216 PF: > { %p1046_p2 = scmp.ge.s32.totalorder %s1202_s17, 2  ;;  %s809_s10 = sand.u32 1, %s1182_s12  }
 0x217   : > { %s810_s11 = scalar_lea.sflag [#allocation4], %s809_s10 }
 0x218   : > { %p1043_p3 = pnand %p1046_p2, %p1274_p8 }
 0x21a   : > { %1177 = dma.done.wait (!%p1043_p3), %s810_s11, 128  }
 0x21b   : > { %1179 = vsyncadd (!%p1043_p3), %s810_s11, 4294967168  ;;  %s16_s17 = sadd.s32 1, %s1202_s17   ;;  %s1423_s12 = smov %s1186_s13 }
 0x21c   : > { %p13_p5 = scmp.ge.s32.totalorder %s16_s17, 4   ;;  %s1424_s13 = smov %s1190_s14 }
 0x21d   : > { %s1425_s14 = smov %s1280_s25  ;;  %s1426_s15 = smov %s1198_s16 }
 0x21e   : > { %s1427_s16 = smov %s1429_s20  ;;  %15 = sbr.rel (!%p13_p5) target bundleno = 4 (0x4), region = 76 }
 0x225   :  { %815 = vsyncpa [#allocation4], 1 }
 0x226   :  { %817 = vsyncpa [#allocation4 + $0x1], 1 }

</bundles_post_ra>
